<compile_context>
chip_gen: v5e
topology: v5e:2x2
jax: 0.10.0
libtpu: 0.0.40
codegen_flags: <defaults>
</compile_context>

<pallas_src>
import functools

import jax
import jax.numpy as jnp
from jax.experimental import pallas as pl
from jax.experimental.pallas import tpu as pltpu


def _alpha_embed_kernel(alpha_ref, w1_ref, b1_ref, w2_ref, b2_ref, out_ref, *, pack):
    # alpha_ref: (tile, pack)   w1_ref: (1, H)   b1_ref: (1, H)
    # w2_ref:    (H, E)         b2_ref: (1, E)   out_ref: (tile, pack*E)
    a = alpha_ref[...]
    w1 = w1_ref[...]
    b1 = b1_ref[...]
    w2 = w2_ref[...]
    b2 = b2_ref[...]

    outs = []
    for p in range(pack):  # static, tiny unroll (pack is 1 or 2)
        # Linear(1, H) as broadcasted multiply + bias, then ReLU.
        h = jnp.maximum(a[:, p:p + 1] * w1 + b1, 0.0)          # (tile, H)
        # Linear(H, E) on the MXU.
        o = jnp.dot(h, w2, preferred_element_type=jnp.float32) + b2
        outs.append(o)

    out = outs[0] if pack == 1 else jnp.concatenate(outs, axis=-1)
    out_ref[...] = out.astype(out_ref.dtype)


def alpha_embedding_net(alpha, w1, b1, w2, b2, *, tile_rows=512):
    """AlphaEmbeddingNet forward in a single gridded Pallas kernel.

    alpha: (B, 1) f32
    w1:    (1, H) f32     b1: (1, H) f32
    w2:    (H, E) f32     b2: (1, E) f32
    returns (B, E) f32
    """
    assert tile_rows % 8 == 0, "tile_rows must be a multiple of 8"
    B = alpha.shape[0]
    H = w1.shape[1]
    E = w2.shape[1]

    # Pack consecutive batch rows so the output's lane dim is >= 128 (dense vst).
    if E < 128 and 128 % E == 0:
        pack = 128 // E
    else:
        pack = 1
    Ep = E * pack

    # Row tiling over the packed batch dimension (pad to a whole number of tiles).
    Bp = pl.cdiv(B, pack)
    if Bp <= tile_rows:
        tile = Bp                       # single block: full-dim rule applies
        Bp_pad = Bp
    else:
        tile = tile_rows                # multiple of 8
        Bp_pad = pl.cdiv(Bp, tile) * tile
    B_pad = Bp_pad * pack

    alpha_pad = alpha
    if B_pad != B:
        alpha_pad = jnp.pad(alpha, ((0, B_pad - B), (0, 0)))
    # Row-major relayout: packed row r holds batch rows r*pack .. r*pack+pack-1.
    alpha_p = alpha_pad.reshape(Bp_pad, pack)

    grid = (Bp_pad // tile,)
    kernel = functools.partial(_alpha_embed_kernel, pack=pack)

    out_p = pl.pallas_call(
        kernel,
        out_shape=jax.ShapeDtypeStruct((Bp_pad, Ep), jnp.float32),
        grid=grid,
        in_specs=[
            pl.BlockSpec((tile, pack), lambda i: (i, 0)),   # alpha tile (pipelined)
            pl.BlockSpec((1, H), lambda i: (0, 0)),         # w1 (resident)
            pl.BlockSpec((1, H), lambda i: (0, 0)),         # b1 (resident)
            pl.BlockSpec((H, E), lambda i: (0, 0)),         # w2 (resident)
            pl.BlockSpec((1, E), lambda i: (0, 0)),         # b2 (resident)
        ],
        out_specs=pl.BlockSpec((tile, Ep), lambda i: (i, 0)),
        compiler_params=pltpu.CompilerParams(
            dimension_semantics=("parallel",)),
    )(alpha_p, w1, b1, w2, b2)

    # Undo the lane packing (pure reshape of the contiguous buffer) and strip padding.
    out = out_p.reshape(B_pad, E)
    if B_pad != B:
        out = out[:B]
    return out


def init_params(key, embed_dim=64, hidden=64):
    """Deterministic parameter init (PyTorch Linear-style uniform bounds)."""
    k1, k2, k3, k4 = jax.random.split(key, 4)
    bound1 = 1.0                                   # 1/sqrt(in_features=1)
    w1 = jax.random.uniform(k1, (1, hidden), jnp.float32, -bound1, bound1)
    b1 = jax.random.uniform(k2, (1, hidden), jnp.float32, -bound1, bound1)
    bound2 = 1.0 / jnp.sqrt(float(hidden))         # 1/sqrt(64)
    w2 = jax.random.uniform(k3, (hidden, embed_dim), jnp.float32, -bound2, bound2)
    b2 = jax.random.uniform(k4, (1, embed_dim), jnp.float32, -bound2, bound2)
    return w1, b1, w2, b2


def reference_forward(alpha, w1, b1, w2, b2):
    """Plain-JAX reference matching the PyTorch module semantics."""
    h = jnp.maximum(alpha @ w1 + b1, 0.0)
    return h @ w2 + b2


if __name__ == "__main__":
    key = jax.random.PRNGKey(0)
    k_alpha, k_params, k_alpha2 = jax.random.split(key, 3)

    B = 2
    embed_dim = 64
    alpha = jax.random.uniform(k_alpha, (B, 1), jnp.float32)   # SAC alpha values
    w1, b1, w2, b2 = init_params(k_params, embed_dim=embed_dim)

    out = jax.block_until_ready(alpha_embedding_net(alpha, w1, b1, w2, b2))
    ref = reference_forward(alpha, w1, b1, w2, b2)
    assert out.shape == (B, embed_dim), out.shape
    assert jnp.allclose(out, ref, atol=1e-5, rtol=1e-5), "mismatch vs reference (B=2)"

    # Exercise the gridded / padded path (odd B, multiple row tiles) cheaply.
    B2 = 37
    alpha2 = jax.random.uniform(k_alpha2, (B2, 1), jnp.float32)
    out2 = jax.block_until_ready(
        alpha_embedding_net(alpha2, w1, b1, w2, b2, tile_rows=8))
    ref2 = reference_forward(alpha2, w1, b1, w2, b2)
    assert out2.shape == (B2, embed_dim), out2.shape
    assert jnp.allclose(out2, ref2, atol=1e-5, rtol=1e-5), "mismatch vs reference (B=37)"

    print("KERNEL_OK")
</pallas_src>

<mosaic_0001>
module attributes {stable_mosaic.version = 11 : i64} {
  func.func @_alpha_embed_kernel(%arg0: i32, %arg1: memref<1x2xf32, #tpu.memory_space<vmem>>, %arg2: memref<1x64xf32, #tpu.memory_space<vmem>>, %arg3: memref<1x64xf32, #tpu.memory_space<vmem>>, %arg4: memref<64x64xf32, #tpu.memory_space<vmem>>, %arg5: memref<1x64xf32, #tpu.memory_space<vmem>>, %arg6: memref<1x128xf32, #tpu.memory_space<vmem>>) attributes {dimension_semantics = [#tpu.dimension_semantics<parallel>], iteration_bounds = array<i64: 1>, scalar_prefetch = 0 : i64, scratch_operands = 0 : i64, tpu.core_type = #tpu.core_type<tc>, window_params = [{transform_indices = @transform_0, window_bounds = array<i64: 1, 2>}, {pipeline_mode = #tpu.pipeline_mode<synchronous>, transform_indices = @transform_1, window_bounds = array<i64: 1, 64>}, {pipeline_mode = #tpu.pipeline_mode<synchronous>, transform_indices = @transform_2, window_bounds = array<i64: 1, 64>}, {pipeline_mode = #tpu.pipeline_mode<synchronous>, transform_indices = @transform_3, window_bounds = array<i64: 64, 64>}, {pipeline_mode = #tpu.pipeline_mode<synchronous>, transform_indices = @transform_4, window_bounds = array<i64: 1, 64>}, {transform_indices = @transform_5, window_bounds = array<i64: 1, 128>}]} {
    %c0 = arith.constant 0 : index
    %c0_0 = arith.constant 0 : index
    %0 = vector.load %arg1[%c0, %c0_0] : memref<1x2xf32, #tpu.memory_space<vmem>>, vector<1x2xf32>
    %c0_1 = arith.constant 0 : index
    %c0_2 = arith.constant 0 : index
    %1 = vector.load %arg2[%c0_1, %c0_2] : memref<1x64xf32, #tpu.memory_space<vmem>>, vector<1x64xf32>
    %c0_3 = arith.constant 0 : index
    %c0_4 = arith.constant 0 : index
    %2 = vector.load %arg3[%c0_3, %c0_4] : memref<1x64xf32, #tpu.memory_space<vmem>>, vector<1x64xf32>
    %c0_5 = arith.constant 0 : index
    %c0_6 = arith.constant 0 : index
    %3 = vector.load %arg4[%c0_5, %c0_6] : memref<64x64xf32, #tpu.memory_space<vmem>>, vector<64x64xf32>
    %c0_7 = arith.constant 0 : index
    %c0_8 = arith.constant 0 : index
    %4 = vector.load %arg5[%c0_7, %c0_8] : memref<1x64xf32, #tpu.memory_space<vmem>>, vector<1x64xf32>
    %5 = vector.extract_strided_slice %0 {offsets = [0, 0], sizes = [1, 1], strides = [1, 1]} : vector<1x2xf32> to vector<1x1xf32>
    %6 = vector.broadcast %5 : vector<1x1xf32> to vector<1x64xf32>
    %7 = arith.mulf %6, %1 : vector<1x64xf32>
    %8 = arith.addf %7, %2 : vector<1x64xf32>
    %cst = arith.constant 0.000000e+00 : f32
    %9 = vector.broadcast %cst : f32 to vector<1x64xf32>
    %10 = arith.maximumf %8, %9 : vector<1x64xf32>
    %cst_9 = arith.constant dense<0.000000e+00> : vector<1x64xf32>
    %11 = tpu.matmul %10, %3, %cst_9 {dimension_numbers = #tpu.dot_dimension_numbers<[1], [0], [0], [1], [0, 0, 1, 1], [], []>} : vector<1x64xf32>, vector<64x64xf32>, vector<1x64xf32> -> vector<1x64xf32>
    %12 = arith.addf %11, %4 : vector<1x64xf32>
    %13 = vector.extract_strided_slice %0 {offsets = [0, 1], sizes = [1, 1], strides = [1, 1]} : vector<1x2xf32> to vector<1x1xf32>
    %14 = vector.broadcast %13 : vector<1x1xf32> to vector<1x64xf32>
    %15 = arith.mulf %14, %1 : vector<1x64xf32>
    %16 = arith.addf %15, %2 : vector<1x64xf32>
    %cst_10 = arith.constant 0.000000e+00 : f32
    %17 = vector.broadcast %cst_10 : f32 to vector<1x64xf32>
    %18 = arith.maximumf %16, %17 : vector<1x64xf32>
    %cst_11 = arith.constant dense<0.000000e+00> : vector<1x64xf32>
    %19 = tpu.matmul %18, %3, %cst_11 {dimension_numbers = #tpu.dot_dimension_numbers<[1], [0], [0], [1], [0, 0, 1, 1], [], []>} : vector<1x64xf32>, vector<64x64xf32>, vector<1x64xf32> -> vector<1x64xf32>
    %20 = arith.addf %19, %4 : vector<1x64xf32>
    %21 = tpu.concatenate %12, %20 in 1 : vector<1x64xf32>, vector<1x64xf32> -> vector<1x128xf32>
    %c0_12 = arith.constant 0 : index
    %c0_13 = arith.constant 0 : index
    %22 = vector.load %arg6[%c0_12, %c0_13] : memref<1x128xf32, #tpu.memory_space<vmem>>, vector<1x128xf32>
    tpu.vector_store %arg6[%c0_12, %c0_13], %21 {strides = array<i32>} : memref<1x128xf32, #tpu.memory_space<vmem>>, vector<1x128xf32>,
    return
  }
  func.func @transform_0(%arg0: i32) -> (i32, i32) {
    %c0_i32 = arith.constant 0 : i32
    %c0_i32_0 = arith.constant 0 : i32
    return %arg0, %c0_i32 : i32, i32
  }
  func.func @transform_1(%arg0: i32) -> (i32, i32) {
    %c0_i32 = arith.constant 0 : i32
    %c0_i32_0 = arith.constant 0 : i32
    %c0_i32_1 = arith.constant 0 : i32
    return %c0_i32, %c0_i32_0 : i32, i32
  }
  func.func @transform_2(%arg0: i32) -> (i32, i32) {
    %c0_i32 = arith.constant 0 : i32
    %c0_i32_0 = arith.constant 0 : i32
    %c0_i32_1 = arith.constant 0 : i32
    return %c0_i32, %c0_i32_0 : i32, i32
  }
  func.func @transform_3(%arg0: i32) -> (i32, i32) {
    %c0_i32 = arith.constant 0 : i32
    %c0_i32_0 = arith.constant 0 : i32
    %c0_i32_1 = arith.constant 0 : i32
    return %c0_i32, %c0_i32_0 : i32, i32
  }
  func.func @transform_4(%arg0: i32) -> (i32, i32) {
    %c0_i32 = arith.constant 0 : i32
    %c0_i32_0 = arith.constant 0 : i32
    %c0_i32_1 = arith.constant 0 : i32
    return %c0_i32, %c0_i32_0 : i32, i32
  }
  func.func @transform_5(%arg0: i32) -> (i32, i32) {
    %c0_i32 = arith.constant 0 : i32
    %c0_i32_0 = arith.constant 0 : i32
    return %arg0, %c0_i32 : i32, i32
  }
}

</mosaic_0001>

<bundles_post_ra>
// kernel: tpu_custom_call.1
= control target key start
LH: loop header
LB: loop body
LE: loop exit
PB: predicated region body
PF: predicated region fallthrough
CT: control target
= control target key end

     0   :  { %10 = vsyncpa [#allocation3], 0  ;;  %s340_s0 = inlined_call_operand.hbm [shape: f32[1,2], index: 0, kind: input, shape index: {}]   ;;  %s341_s1 = inlined_call_operand.hbm [shape: f32[1,64], index: 1, kind: input, shape index: {}]   ;;  %s342_s2 = inlined_call_operand.vmem [shape: f32[1,64], index: 2, kind: input, shape index: {}]   ;;  %s343_s3 = inlined_call_operand.hbm [shape: f32[64,64], index: 3, kind: input, shape index: {}]   ;;  %s344_s4 = inlined_call_operand.vmem [shape: f32[1,64], index: 4, kind: input, shape index: {}]   ;;  %s345_s5 = inlined_call_operand.hbm [shape: f32[1,128], index: 5, kind: output, shape index: {}]  }
   0x1   :  { %11 = vsyncpa [#allocation6], 0  ;;  %s29_s20 = sshll.u32 %s341_s1, 4  ;;  %s30_s20 = int_to_ptr.hbm [resolvable:$true] %s29_s20 }
   0x2   :  { %12 = vsyncpa [#allocation4], 0  ;;  %s280_s21 = smov [#allocation5]   ;;  %s18_s25 = sshll.u32 %s340_s0, 4  ;;  %s19_s25 = int_to_ptr.hbm [resolvable:$true] %s18_s25 }
   0x3   :  { %s31_s22 = sshll.u32 %s280_s21, 4  ;;  %s281_s26 = smov [#allocation2]   ;;  %s32_s22 = int_to_ptr.vmem [resolvable:$true] %s31_s22 }
   0x4   :  { %34 = dma.hbm_to_vmem [thread:$0]  %s30_s20, 16, %s32_s22, [#allocation6]  }
   0x5   :  { %s20_s27 = sshll.u32 %s281_s26, 4  ;;  %s41_s30 = sshll.u32 %s343_s3, 4  ;;  %s21_s27 = int_to_ptr.vmem [resolvable:$true] %s20_s27  ;;  %s42_s30 = int_to_ptr.hbm [resolvable:$true] %s41_s30 }
   0x6   :  { %23 = dma.hbm_to_vmem [thread:$0]  %s19_s25, 16, %s21_s27, [#allocation3]  }
   0x7   :  { %s282_s1 = smov [#allocation7]   ;;  %s283_s7 = smov 128  }
   0x8   :  { %s43_s6 = sshll.u32 %s282_s1, 4  ;;  %s284_s8 = smov 8   ;;  %s44_s6 = int_to_ptr.vmem [resolvable:$true] %s43_s6 }
   0x9   :  { %49 = dma.hbm_to_vmem [thread:$0]  %s42_s30, 1024, %s44_s6, [#allocation6], %s283_s7, %s283_s7, %s284_s8  }
   0xa   :  { %274 = dma.done.wait [#allocation3], 16  }
   0xb   :  { %275 = vsyncadd [#allocation3], 4294967280 }
   0xc   :  { %276 = dma.done.wait [#allocation6], 1040  }
   0xd   :  { %277 = vsyncadd [#allocation6], 4294966256  ;;  %v285_v0 = vmov 1   ;;  %v64_v1 = vld [vmem:[#allocation2] sm:$0x1]  ;;  %v73_v3 = vld [vmem:[#allocation7 + $0x30] sm:$0xff] }
   0xe   :  { %175 = vset.pattern.permute.xlu0 %v285_v0  ;;  %v74_v2 = vld [vmem:[#allocation7 + $0x38] sm:$0xff]  ;;  %v72_v4 = vld [vmem:[#allocation7 + $0x28] sm:$0xff]  ;;  %v71_v5 = vld [vmem:[#allocation7 + $0x20] sm:$0xff]  ;;  %v286_v6 = vmov 0   ;;  %vm85_vm0 = vcmask 523264   ;;  %s288_s11 = smov [#allocation8]  }
   0xf   :  { %110 = vperm.xlu0 %175, %v64_v1   ;;  %128 = vmatpush.msra.mxu1 %v74_v2  ;;  %v70_v7 = vld [vmem:[#allocation7 + $0x18] sm:$0xff]  ;;  %v69_v8 = vld [vmem:[#allocation7 + $0x10] sm:$0xff]  ;;  %v68_v9 = vld [vmem:[#allocation7 + $0x8] sm:$0xff]  ;;  %s151_s12 = sshll.u32 %s288_s11, 4  ;;  %s153_s15 = sshll.u32 %s345_s5, 4  ;;  %s152_s12 = int_to_ptr.vmem [resolvable:$true] %s151_s12  ;;  %s154_s15 = int_to_ptr.hbm [resolvable:$true] %s153_s15 }
  0x10   :  { %97 = vmatpush.msra.mxu0 %v74_v2  ;;  %v67_v10 = vld [vmem:[#allocation7] sm:$0xff]  ;;  %v65_v11 = vld [vmem:[#allocation5] sm:$0x1]  ;;  %v66_v14 = vld [vmem:[%s342_s2] sm:$0x1]  ;;  %s287_s2 = smov 64  }
  0x11   :  { %129 = vmatpush.msra.mxu1 %v73_v3  ;;  %v75_v23 = vld [vmem:[%s344_s4] sm:$0x1] }
  0x12   :  { %98 = vmatpush.msra.mxu0 %v73_v3 }
  0x13   :  { %130 = vmatpush.msra.mxu1 %v72_v4 }
  0x14   :  { %99 = vmatpush.msra.mxu0 %v72_v4 }
  0x15   :  { %131 = vmatpush.msra.mxu1 %v71_v5 }
  0x16   :  { %100 = vmatpush.msra.mxu0 %v71_v5 }
  0x17   :  { %176 = vset.pattern.permute.xlu0 %v286_v6  ;;  %132 = vmatpush.msra.mxu1 %v70_v7 }
  0x18   :  { %78 = vperm.xlu0 %176, %v64_v1   ;;  %101 = vmatpush.msra.mxu0 %v70_v7 }
  0x19   :  { %133 = vmatpush.msra.mxu1 %v69_v8 }
  0x1a   :  { %102 = vmatpush.msra.mxu0 %v69_v8 }
  0x1b   :  { %134 = vmatpush.msra.mxu1 %v68_v9 }
  0x1c   :  { %103 = vmatpush.msra.mxu0 %v68_v9 }
  0x1d   :  { %135 = vmatpush.msra.mxu1 %v67_v10 }
  0x1e   :  { %104 = vmatpush.msra.mxu0 %v67_v10 }
  0x20   :  { %177 = vset.pattern.permute.xlu0 %v285_v0 }
  0x81   :  { %v111_v12 = vpop.permute.xlu0 %110 }
  0x82   :  { %v113_v13 = vperm.slane %v111_v12, 0 }
  0x84   :  { %v114_v15 = vmul.f32 %v113_v13, %v65_v11 }
  0x86   :  { %v115_v16 = vadd.f32 %v114_v15, %v66_v14 }
  0x88   :  { %v116_v17 = vmax.f32 %v115_v16, 0.0 }
  0x8a   :  { %165 = vmatmul.msk.f32.vlgmr.msra.gmra.mxu1 %vm85_vm0, %v116_v17  ;;  %v79_v18 = vpop.permute.xlu0 %78 }
  0x8b   :  { %v81_v19 = vperm.slane %v79_v18, 0 }
  0x8d   :  { %v82_v20 = vmul.f32 %v81_v19, %v65_v11 }
  0x8f   :  { %v83_v21 = vadd.f32 %v82_v20, %v66_v14 }
  0x91   :  { %v84_v22 = vmax.f32 %v83_v21, 0.0 }
  0x93   :  { %164 = vmatmul.msk.f32.vlgmr.msra.gmra.mxu0 %vm85_vm0, %v84_v22 }
 0x107   :  { %v137_v24 = vpop.f32.mrf.mxu1 }
 0x108   :  { %v138_v25 = vadd.f32 %v137_v24, %v75_v23 }
 0x10a   :  { %141 = vrot.lane.b32.xlu1 %v138_v25, %s287_s2 }
 0x110   :  { %v106_v26 = vpop.f32.mrf.mxu0 }
 0x111   :  { %v107_v27 = vadd.f32 %v106_v26, %v75_v23 }
 0x17c   :  { %v142_v28 = vpop.permute.xlu1 %141 }
 0x17d   :  { %v144_v29 = vsel %vm85_vm0, %v107_v27, %v142_v28 }
 0x17e   :  { %145 = vst [vmem:[#allocation8] sm:$0x1] %v144_v29 }
 0x17f   :  { %156 = dma.vmem_to_hbm [thread:$0]  %s152_s12, 16, %s154_s15, [#allocation4]  }
 0x180   :  { %278 = dma.done.wait [#allocation4], 16  }
 0x181   :  { %279 = vsyncadd [#allocation4], 4294967280 }
 0x182   :  { %161 = vsyncpa [#allocation3], 1 }
 0x183   :  { %162 = vsyncpa [#allocation6], 1 }
 0x184   :  { %163 = vsyncpa [#allocation4], 1 }

</bundles_post_ra>
